<compile_context>
chip_gen: v7x
topology: tpu7x:2x2x1
jax: 0.10.0
libtpu: 0.0.40
codegen_flags: <defaults>
</compile_context>

<pallas_src>
import functools

import jax
import jax.numpy as jnp
from jax import lax
from jax.experimental import pallas as pl
from jax.experimental.pallas import tpu as pltpu


def _transition_kernel(x_ref, scale_ref, shift_ref, w_ref, out_ref):
    # x_ref:     (1, Cin, T)   native NCHW slab: channels on sublanes, flat spatial on lanes
    # scale_ref: (Cin, 1)      gamma / sqrt(var + eps)             (compute dtype)
    # shift_ref: (Cin, 1)      beta - mean * scale                 (compute dtype)
    # w_ref:     (Cout, Cin)   pre-transposed, pre-cast 1x1 ConvTranspose2d weight
    # out_ref:   (1, Cout, T)  conv result; written exactly once, lane-dense (T % 128 == 0)
    x = x_ref[0]                                                   # (Cin, T)
    y = jnp.maximum(x * scale_ref[...] + shift_ref[...], 0.0)      # BN + ReLU (lane bcast)
    # (Cout, Cin) x (Cin, T) -> (Cout, T), MXU-native orientation, f32 accumulation.
    z = lax.dot_general(w_ref[...], y,
                        dimension_numbers=(((1,), (0,)), ((), ())),
                        preferred_element_type=jnp.float32)
    out_ref[0] = z.astype(out_ref.dtype)


def _vmem_budget_bytes():
    """Per-TensorCore VMEM budget: ~96 MiB on v5e/v6e (128 MiB phys), ~48 MiB on v7x."""
    cap = None
    get_info = getattr(pltpu, "get_tpu_info", None)
    if get_info is not None:
        try:
            cap = getattr(get_info(), "vmem_capacity_bytes", None)
        except Exception:
            cap = None
    if not cap:
        cap = 64 * 1024 * 1024          # conservative fallback (v7x per-core size)
    return min(int(cap) * 3 // 4, 96 * 1024 * 1024)


def _pick_hw_tile(hw_padded, n_batch, cin, cout, in_bytes, out_bytes, vmem_budget):
    # Approximate per-lane-element VMEM cost: double-buffered x block, double-buffered
    # output block, plus in-kernel temporaries (BN+ReLU result in compute dtype and the
    # f32 dot result), with ~1.5x headroom for compiler scratch / layout padding.
    per_elem = (2 * in_bytes * cin        # x, double-buffered
                + 2 * out_bytes * cout    # out, double-buffered
                + in_bytes * cin          # y = BN+ReLU temporary
                + 4 * cout)               # f32 accumulator before the output cast
    max_tile = int(vmem_budget // int(per_elem * 1.5))
    max_tile = max(128, (max_tile // 128) * 128)
    max_tile = min(max_tile, 8192)        # sweepable cap; 8192 amortizes the ~0.35us/step
    if n_batch == 1 and hw_padded >= 256:
        # keep >= 2 parallel grid steps so both v7x TensorCores get work
        max_tile = min(max_tile, max(128, (hw_padded // 256) * 128))
    max_tile = min(max_tile, hw_padded)
    best, t = 128, 128
    while t <= max_tile:
        if hw_padded % t == 0:
            best = t
        t += 128
    return best


def transition_block_forward(x_nchw, gamma, beta, running_mean, running_var, conv_w,
                             *, eps=1e-5, use_batch_stats=True,
                             compute_dtype=jnp.float32, out_dtype=None, hw_tile=None):
    """Forward pass of TransitionBlock. conv_w has shape (Cin, Cout) = tconv.weight[:, :, 0, 0]."""
    N, Cin, H, W = x_nchw.shape
    Cout = conv_w.shape[1]
    HW = H * W
    out_dtype = compute_dtype if out_dtype is None else out_dtype
    vmem_budget = _vmem_budget_bytes()

    if use_batch_stats:
        # Training-mode BatchNorm2d: fused E[x]/E[x^2] pass (XLA multi-output reduction)
        # in f32 over the native NCHW input; clamp variance at 0 (cancellation guard).
        xf = x_nchw.astype(jnp.float32)
        mean = jnp.mean(xf, axis=(0, 2, 3))
        mean_sq = jnp.mean(xf * xf, axis=(0, 2, 3))
        var = jnp.maximum(mean_sq - jnp.square(mean), 0.0)
    else:
        mean = running_mean.astype(jnp.float32)
        var = running_var.astype(jnp.float32)

    inv_std = gamma.astype(jnp.float32) / jnp.sqrt(var + eps)                 # (Cin,)
    scale = inv_std.reshape(Cin, 1).astype(compute_dtype)
    shift = (beta.astype(jnp.float32) - mean * inv_std).reshape(Cin, 1).astype(compute_dtype)
    w_t = conv_w.T.astype(compute_dtype)       # (Cout, Cin): cast / transposed ONCE here

    # Native layout, spatial flattened (contiguous => free reshape, no HBM transpose).
    # In a full network the producer would already emit compute_dtype; the cast below is
    # one fused pass only in this standalone script.
    x = x_nchw.reshape(N, Cin, HW).astype(compute_dtype)

    # Pad the flat spatial dim to a multiple of 128 so output stores stay lane-dense
    # (masked partial stores measured up to ~4.5x slower); the padded tail is sliced off.
    HW_pad = max(128, ((HW + 127) // 128) * 128)
    if HW_pad != HW:
        x = jnp.pad(x, ((0, 0), (0, 0), (0, HW_pad - HW)))

    if hw_tile is None:
        hw_tile = _pick_hw_tile(HW_pad, N, Cin, Cout,
                                jnp.dtype(compute_dtype).itemsize,
                                jnp.dtype(out_dtype).itemsize,
                                vmem_budget)
    assert HW_pad % hw_tile == 0 and hw_tile % 128 == 0, (HW_pad, hw_tile)
    n_hw = HW_pad // hw_tile

    # TODO(synk): F.dropout not implemented in-kernel; droprate=0.0 (default) => no-op.
    # NOTE: if the input DMA is still exposed after tiling, sweep
    #       pipeline_mode=pl.Buffered(3) on the x BlockSpec (default depth 2 kept here).

    z = pl.pallas_call(
        _transition_kernel,
        out_shape=jax.ShapeDtypeStruct((N, Cout, HW_pad), out_dtype),
        grid_spec=pltpu.PrefetchScalarGridSpec(
            num_scalar_prefetch=0,
            grid=(N, n_hw),
            in_specs=[
                pl.BlockSpec((1, Cin, hw_tile), lambda n, t: (n, 0, t)),
                pl.BlockSpec((Cin, 1), lambda n, t: (0, 0)),      # resident
                pl.BlockSpec((Cin, 1), lambda n, t: (0, 0)),      # resident
                pl.BlockSpec((Cout, Cin), lambda n, t: (0, 0)),   # resident
            ],
            out_specs=pl.BlockSpec((1, Cout, hw_tile), lambda n, t: (n, 0, t)),
        ),
        compiler_params=pltpu.CompilerParams(
            dimension_semantics=("parallel", "parallel"),
            vmem_limit_bytes=vmem_budget,
        ),
    )(x, scale, shift, w_t)

    # 2x nearest-neighbor upsample: broadcast fused into the final (already NCHW) write.
    if HW_pad != HW:
        z = z[:, :, :HW]
    z = z.reshape(N, Cout, H, W)
    out = jnp.broadcast_to(z[:, :, :, None, :, None], (N, Cout, H, 2, W, 2))
    return out.reshape(N, Cout, 2 * H, 2 * W)


if __name__ == "__main__":
    N, Cin, Cout, H, W = 2, 4, 8, 16, 16
    key = jax.random.PRNGKey(0)
    kx, kg, kb, kw, kx2 = jax.random.split(key, 5)

    x = jax.random.normal(kx, (N, Cin, H, W), jnp.float32)
    # deterministic synthetic parameters (shapes from nn.BatchNorm2d / ConvTranspose2d)
    gamma = 1.0 + 0.1 * jax.random.normal(kg, (Cin,), jnp.float32)
    beta = 0.1 * jax.random.normal(kb, (Cin,), jnp.float32)
    running_mean = jnp.zeros((Cin,), jnp.float32)
    running_var = jnp.ones((Cin,), jnp.float32)
    # ConvTranspose2d weight shape is (in_planes, out_planes, 1, 1); keep the (Cin, Cout) slice
    conv_w = jax.random.normal(kw, (Cin, Cout), jnp.float32) / jnp.sqrt(Cin)

    eps = 1e-5

    def reference_f32(xr):
        mean = jnp.mean(xr, axis=(0, 2, 3))
        var = jnp.var(xr, axis=(0, 2, 3))
        inv_std = gamma / jnp.sqrt(var + eps)
        y = jnp.maximum(xr * inv_std[None, :, None, None]
                        + (beta - mean * inv_std)[None, :, None, None], 0.0)
        z = jnp.einsum('nihw,io->nohw', y, conv_w)
        return jnp.repeat(jnp.repeat(z, 2, axis=2), 2, axis=3)

    def reference_bf16(xr):
        f32, bf16 = jnp.float32, jnp.bfloat16
        mean = jnp.mean(xr, axis=(0, 2, 3))
        var = jnp.var(xr, axis=(0, 2, 3))
        inv_std = gamma / jnp.sqrt(var + eps)
        xq = xr.astype(bf16).astype(f32)
        sq = inv_std.astype(bf16).astype(f32)[None, :, None, None]
        hq = (beta - mean * inv_std).astype(bf16).astype(f32)[None, :, None, None]
        y = jnp.maximum(xq * sq + hq, 0.0).astype(bf16).astype(f32)
        w = conv_w.astype(bf16).astype(f32)
        z = jnp.einsum('nihw,io->nohw', y, w)
        return jnp.repeat(jnp.repeat(z, 2, axis=2), 2, axis=3)

    # 1) f32, auto tile (exercises the VMEM-budget tile picker)
    fwd_auto = jax.jit(transition_block_forward)
    out = jax.block_until_ready(fwd_auto(x, gamma, beta, running_mean, running_var, conv_w))
    ref = reference_f32(x)
    assert out.shape == (N, Cout, 2 * H, 2 * W), out.shape
    assert jnp.allclose(out, ref, atol=1e-4, rtol=1e-4), float(jnp.max(jnp.abs(out - ref)))

    # 2) f32, forced hw_tile=128 (exercises the spatial grid axis: grid = (2, 2))
    fwd_f32 = jax.jit(functools.partial(transition_block_forward, hw_tile=128))
    out = jax.block_until_ready(fwd_f32(x, gamma, beta, running_mean, running_var, conv_w))
    assert jnp.allclose(out, ref, atol=1e-4, rtol=1e-4), float(jnp.max(jnp.abs(out - ref)))

    # 3) bf16 activation / output path (the bandwidth recommendation on v5e/v6e/v7x)
    fwd_bf16 = jax.jit(functools.partial(transition_block_forward, hw_tile=128,
                                         compute_dtype=jnp.bfloat16))
    out_bf = jax.block_until_ready(
        fwd_bf16(x, gamma, beta, running_mean, running_var, conv_w))
    assert out_bf.shape == (N, Cout, 2 * H, 2 * W), out_bf.shape
    assert out_bf.dtype == jnp.bfloat16, out_bf.dtype
    ref_bf = reference_bf16(x)
    diff = jnp.abs(out_bf.astype(jnp.float32) - ref_bf)
    assert jnp.allclose(out_bf.astype(jnp.float32), ref_bf, atol=0.1, rtol=0.1), float(jnp.max(diff))

    # 4) odd spatial size (HW=100 -> padded to 128): exercises the lane-dense padding path
    x_odd = jax.random.normal(kx2, (1, Cin, 10, 10), jnp.float32)
    out_odd = jax.block_until_ready(
        fwd_auto(x_odd, gamma, beta, running_mean, running_var, conv_w))
    ref_odd = reference_f32(x_odd)
    assert out_odd.shape == (1, Cout, 20, 20), out_odd.shape
    assert jnp.allclose(out_odd, ref_odd, atol=1e-4, rtol=1e-4), \
        float(jnp.max(jnp.abs(out_odd - ref_odd)))

    print("KERNEL_OK")
</pallas_src>

<mosaic_0001>
module attributes {stable_mosaic.version = 11 : i64} {
  func.func @_transition_kernel(%arg0: i32, %arg1: i32, %arg2: memref<1x4x256xf32, #tpu.memory_space<vmem>>, %arg3: memref<4x1xf32, #tpu.memory_space<vmem>>, %arg4: memref<4x1xf32, #tpu.memory_space<vmem>>, %arg5: memref<8x4xf32, #tpu.memory_space<vmem>>, %arg6: memref<1x8x256xf32, #tpu.memory_space<vmem>>) attributes {dimension_semantics = [#tpu.dimension_semantics<parallel>, #tpu.dimension_semantics<parallel>], iteration_bounds = array<i64: 2, 1>, scalar_prefetch = 0 : i64, scratch_operands = 0 : i64, tpu.core_type = #tpu.core_type<tc>, window_params = [{transform_indices = @transform_0, window_bounds = array<i64: 1, 4, 256>}, {pipeline_mode = #tpu.pipeline_mode<synchronous>, transform_indices = @transform_1, window_bounds = array<i64: 4, 1>}, {pipeline_mode = #tpu.pipeline_mode<synchronous>, transform_indices = @transform_2, window_bounds = array<i64: 4, 1>}, {pipeline_mode = #tpu.pipeline_mode<synchronous>, transform_indices = @transform_3, window_bounds = array<i64: 8, 4>}, {transform_indices = @transform_4, window_bounds = array<i64: 1, 8, 256>}]} {
    %c0 = arith.constant 0 : index
    %c0_0 = arith.constant 0 : index
    %c0_1 = arith.constant 0 : index
    %0 = vector.load %arg2[%c0, %c0_0, %c0_1] : memref<1x4x256xf32, #tpu.memory_space<vmem>>, vector<1x4x256xf32>
    %1 = vector.shape_cast %0 : vector<1x4x256xf32> to vector<4x256xf32>
    %c0_2 = arith.constant 0 : index
    %c0_3 = arith.constant 0 : index
    %2 = vector.load %arg3[%c0_2, %c0_3] : memref<4x1xf32, #tpu.memory_space<vmem>>, vector<4x1xf32>
    %3 = vector.broadcast %2 : vector<4x1xf32> to vector<4x256xf32>
    %4 = arith.mulf %1, %3 : vector<4x256xf32>
    %c0_4 = arith.constant 0 : index
    %c0_5 = arith.constant 0 : index
    %5 = vector.load %arg4[%c0_4, %c0_5] : memref<4x1xf32, #tpu.memory_space<vmem>>, vector<4x1xf32>
    %6 = vector.broadcast %5 : vector<4x1xf32> to vector<4x256xf32>
    %7 = arith.addf %4, %6 : vector<4x256xf32>
    %cst = arith.constant 0.000000e+00 : f32
    %8 = vector.broadcast %cst : f32 to vector<4x256xf32>
    %9 = arith.maximumf %7, %8 : vector<4x256xf32>
    %c0_6 = arith.constant 0 : index
    %c0_7 = arith.constant 0 : index
    %10 = vector.load %arg5[%c0_6, %c0_7] : memref<8x4xf32, #tpu.memory_space<vmem>>, vector<8x4xf32>
    %cst_8 = arith.constant dense<0.000000e+00> : vector<8x256xf32>
    %11 = tpu.matmul %10, %9, %cst_8 {dimension_numbers = #tpu.dot_dimension_numbers<[1], [0], [0], [1], [0, 0, 1, 1], [], []>} : vector<8x4xf32>, vector<4x256xf32>, vector<8x256xf32> -> vector<8x256xf32>
    %c0_9 = arith.constant 0 : index
    %c0_10 = arith.constant 0 : index
    %c0_11 = arith.constant 0 : index
    %12 = vector.load %arg6[%c0_9, %c0_10, %c0_11] : memref<1x8x256xf32, #tpu.memory_space<vmem>>, vector<1x8x256xf32>
    %13 = vector.shape_cast %12 : vector<1x8x256xf32> to vector<8x256xf32>
    %14 = vector.shape_cast %11 : vector<8x256xf32> to vector<1x8x256xf32>
    tpu.vector_store %arg6[%c0_9, %c0_10, %c0_11], %14 {strides = array<i32>} : memref<1x8x256xf32, #tpu.memory_space<vmem>>, vector<1x8x256xf32>,
    return
  }
  func.func @transform_0(%arg0: i32, %arg1: i32) -> (i32, i32, i32) {
    %c0_i32 = arith.constant 0 : i32
    %c0_i32_0 = arith.constant 0 : i32
    return %arg0, %c0_i32, %arg1 : i32, i32, i32
  }
  func.func @transform_1(%arg0: i32, %arg1: i32) -> (i32, i32) {
    %c0_i32 = arith.constant 0 : i32
    %c0_i32_0 = arith.constant 0 : i32
    %c0_i32_1 = arith.constant 0 : i32
    return %c0_i32, %c0_i32_0 : i32, i32
  }
  func.func @transform_2(%arg0: i32, %arg1: i32) -> (i32, i32) {
    %c0_i32 = arith.constant 0 : i32
    %c0_i32_0 = arith.constant 0 : i32
    %c0_i32_1 = arith.constant 0 : i32
    return %c0_i32, %c0_i32_0 : i32, i32
  }
  func.func @transform_3(%arg0: i32, %arg1: i32) -> (i32, i32) {
    %c0_i32 = arith.constant 0 : i32
    %c0_i32_0 = arith.constant 0 : i32
    %c0_i32_1 = arith.constant 0 : i32
    return %c0_i32, %c0_i32_0 : i32, i32
  }
  func.func @transform_4(%arg0: i32, %arg1: i32) -> (i32, i32, i32) {
    %c0_i32 = arith.constant 0 : i32
    %c0_i32_0 = arith.constant 0 : i32
    return %arg0, %c0_i32, %arg1 : i32, i32, i32
  }
}

</mosaic_0001>

<bundles_post_ra>
// kernel: transition_block_forward.1
= control target key start
LH: loop header
LB: loop body
LE: loop exit
PB: predicated region body
PF: predicated region fallthrough
CT: control target
= control target key end

     0   :  { %s535_s15 = smov 0   ;;  %s537_s16 = smov 0   ;;  %s577_s0 = inlined_call_operand.vmem [shape: f32[2,4,256], index: 0, kind: input, shape index: {}]   ;;  %s578_s1 = inlined_call_operand.vmem [shape: f32[4,1], index: 1, kind: input, shape index: {}]   ;;  %s579_s2 = inlined_call_operand.vmem [shape: f32[4,1], index: 2, kind: input, shape index: {}]   ;;  %s580_s3 = inlined_call_operand.vmem [shape: f32[8,4], index: 3, kind: input, shape index: {}]   ;;  %s581_s4 = inlined_call_operand.vmem [shape: f32[2,8,256], index: 4, kind: output, shape index: {}]  }
   0x1   :  { %s539_s17 = smov 0  }
   0x2 LB: > { %s26_s18 = sadd.s32 1, %s501_s16  ;;  %p443_p0 = scmp.ge.s32.totalorder %s505_s17, 1  ;;  %s505_s17 = sphi %s539_s17, %s14_s17   ;;  %s501_s16 = sphi %s537_s16, %s583_s16   ;;  %s497_s15 = sphi %s535_s15, %s582_s15  }
   0x3   : > { %p28_p1 = scmp.ge.s32.totalorder %s26_s18, 2  ;;  %p183_p2 = scmp.lt.s32.totalorder %s505_s17, 3 }
   0x5   : > { %s585_s18 = smov (%p28_p1, %s26_s18), 0  ;;  %p184_p3 = pnand %p443_p0, %p183_p2 }
   0x6   : > { %v238_v0 = vld [vmem:[%s578_s1] sm:$0xf] (!%p184_p3)  ;;  %v507_v1 = vmov (!%p184_p3), 0   ;;  %v508_v3 = vmov (!%p184_p3), 0.0   ;;  %p218_p4 = scmp.lt.s32.totalorder (!%p184_p3), %s497_s15, 1  ;;  %v246_v6 = vlaneseq (!%p184_p3)  ;;  %vm274_vm0 = vcmask (!%p184_p3), 1043456  }
   0x7   : > { %187 = sbr.rel (%p184_p3) target bundleno = 364 (0x16c), region = 36  ;;  %482 = vset.pattern.permute.xlu0 (!%p184_p3), %v507_v1  ;;  %v252_v2 = vld [vmem:[%s579_s2] sm:$0xf] (!%p184_p3)  ;;  %343 = vmatprep.mubr.f32.mxu0 (!%p184_p3), %v508_v3  ;;  %v509_v4 = vmov (!%p184_p3), 839922192   ;;  %vm270_vm1 = vcmask (!%p184_p3), 31744  }
   0x8   : > { %241 = vperm.xlu0 (!%p184_p3), %482, %v238_v0   ;;  %v244_v5 = vunpack.c.l.s4 (!%p184_p3), %v509_v4  ;;  %v247_v8 = vshrl.u32 (!%p184_p3), %v246_v6, 7  ;;  %v267_v19 = vld [vmem:[%s580_s3] sm:$0xff] (!%p184_p3) }
   0xa   : > { %v245_v7 = vunpack.c.0.s8 (!%p184_p3), %v244_v5 }
   0xc   : > { %255 = vperm.xlu0 (!%p184_p3), %482, %v252_v2   ;;  %v248_v9 = vsub.s32 (!%p184_p3), %v245_v7, %v247_v8 }
   0xe   : > { %s587_s15 = smov (!%p218_p4, %s497_s15), 1 }
   0xf   : > { %s453_s23 = sshll.u32 %s587_s15, 3  ;;  %s454_s29 = sshll.u32 %s587_s15, 4 }
  0x10   : > { %s225_s26 = scalar_lea.vmem %s577_s0, %s453_s23  ;;  %s235_s6 = scalar_lea.vmem %s581_s4, %s454_s29 }
  0x11   : > { %v237_v12 = vld [vmem:[%s225_s26] sm:$0xff] }
  0x87   : > { %v242_v10 = vpop.permute.xlu0 %241 }
  0x88   : > { %v249_v11 = vrot.slane %v242_v10, %v248_v9 }
  0x8a   : > { %v251_v14 = vmul.f32 %v249_v11, %v237_v12 }
  0x8b   : > { %v256_v13 = vpop.permute.xlu0 %255 }
  0x8c   : > { %v263_v15 = vrot.slane %v256_v13, %v248_v9 }
  0x8e   : > { %v265_v16 = vadd.f32 %v263_v15, %v251_v14 }
  0x90   : > { %v266_v17 = vmax.f32 %v265_v16, 0.0 }
  0x92   : > { %v269_v18 = vcombine.high %v266_v17, %v266_v17 }
  0x94   : > { %448 = vmatprep.subr.msk.mxu0 %vm274_vm0, %v269_v18 }
  0x95   : > { %449 = vmatpush1.msk.msra.mxu0 %vm274_vm0, %v266_v17 }
  0x96   : > { %450 = vmatmul.mubr.msk.f32.vlgmr.msra.gmra.mrb[0].mxu0 %vm270_vm1, %v267_v19 }
 0x169   : > { %v345_v20 = vpop.f32.mrb[0].mxu0 }
 0x16a   : > { %350 = vst [vmem:[%s235_s6] sm:$0xff] %v345_v20  ;;  %v347_v21 = vpop.f32.mrb[1].mxu0 }
 0x16b   : > { %351 = vst [vmem:[%s235_s6 + $0x8] sm:$0xff] %v347_v21 }
 0x16c PF: > { %s14_s17 = sadd.s32 1, %s505_s17   ;;  %s582_s15 = smov %s501_s16 }
 0x16d   : > { %p11_p5 = scmp.ge.s32.totalorder %s14_s17, 4   ;;  %s583_s16 = smov %s585_s18 }
 0x16f   :  { %13 = sbr.rel (!%p11_p5) target bundleno = 2 (0x2), region = 66 }

</bundles_post_ra>
